<compile_context>
chip_gen: v6e
topology: v6e:2x2x1
jax: 0.10.0
libtpu: 0.0.40
codegen_flags: <defaults>
</compile_context>

<pallas_src>
import jax
import jax.numpy as jnp
from jax.experimental import pallas as pl
from jax.experimental.pallas import tpu as pltpu

LEAKY_SLOPE = 0.01   # F.leaky_relu default negative_slope
LANE = 128           # TPU lane width


def _round_up(n, m):
    return ((n + m - 1) // m) * m


def _leaky_relu(x):
    return jnp.where(x >= 0, x, LEAKY_SLOPE * x)


def _cores_per_chip():
    """Best-effort TensorCore count per chip (v7x has 2). Only affects tile sizing."""
    try:
        d = jax.devices()[0]
        nc = getattr(d, "num_cores", None)
        if isinstance(nc, int) and nc >= 1:
            return nc
        kind = str(getattr(d, "device_kind", "")).lower()
        return 2 if "v7" in kind else 1
    except Exception:
        return 1


def mlp_kernel(x_ref, w1_ref, w2_ref, w3_ref, b_ref, out_ref):
    Hp = w1_ref.shape[1]
    Ap = w3_ref.shape[1]

    # x arrives unpadded in f32; cast to bf16 here (free VPU work under the MXU).
    x = x_ref[...].astype(w1_ref.dtype)

    # fc1 (+ dropout1 = identity at inference) + leaky_relu; f32 accumulate/bias/act.
    h1 = jnp.dot(x, w1_ref[...], preferred_element_type=jnp.float32)
    h1 = _leaky_relu(h1 + b_ref[0:1, :Hp])

    # fc2 (+ dropout2 = identity at inference) + leaky_relu
    h2 = jnp.dot(h1.astype(w2_ref.dtype), w2_ref[...],
                 preferred_element_type=jnp.float32)
    h2 = _leaky_relu(h2 + b_ref[1:2, :w2_ref.shape[1]])

    # out layer (no activation)
    y = jnp.dot(h2.astype(w3_ref.dtype), w3_ref[...],
                preferred_element_type=jnp.float32)
    out_ref[...] = (y + b_ref[2:3, :Ap]).astype(out_ref.dtype)


def net_forward(x, params, action_numbers):
    """x: (B, feature_numbers) float32 (unpadded).
    params: w1 (F, Hp) / w2 (Hp, Hp) / w3 (Hp, Ap) bf16 (lane-padded outputs),
            b (3, max(Hp, Ap)) f32 stacked biases."""
    w1, w2, w3, b = params["w1"], params["w2"], params["w3"], params["b"]
    B, F = x.shape
    Hp = w1.shape[1]
    Ap = w3.shape[1]

    # Single grid step on 1-TC chips (v5e/v6e); 128-row parallel tiles on 2-TC chips (v7x).
    cores = _cores_per_chip()
    Bt = LANE if (cores >= 2 and B >= 2 * LANE) else B
    Bp = _round_up(B, Bt)
    xp = x if Bp == B else jnp.zeros((Bp, F), x.dtype).at[:B].set(x)

    grid = (Bp // Bt,)
    flops = 2 * Bp * (F * Hp + Hp * Hp + Hp * Ap)
    bytes_accessed = int(
        xp.size * xp.dtype.itemsize
        + sum(p.size * p.dtype.itemsize for p in (w1, w2, w3, b))
        + Bp * Ap * 4)

    def call(weight_mode):
        def resident(shape):
            # Constant index_map: block never changes -> VMEM-resident across steps.
            return pl.BlockSpec(shape, lambda i: (0, 0), pipeline_mode=weight_mode)

        return pl.pallas_call(
            mlp_kernel,
            out_shape=jax.ShapeDtypeStruct((Bp, Ap), jnp.float32),
            grid=grid,
            in_specs=[
                pl.BlockSpec((Bt, F), lambda i: (i, 0)),   # unpadded f32 activations
                resident(w1.shape), resident(w2.shape), resident(w3.shape),
                resident(b.shape),
            ],
            out_specs=pl.BlockSpec((Bt, Ap), lambda i: (i, 0)),
            compiler_params=pltpu.CompilerParams(
                dimension_semantics=("parallel",)),        # megacore sharding on v7x
            cost_estimate=pl.CostEstimate(
                flops=flops, transcendentals=0, bytes_accessed=bytes_accessed),
        )(xp, w1, w2, w3, b)

    try:
        # Resident weights fetched once: drop the dead second pipeline buffer.
        out_padded = jax.block_until_ready(call(pl.Buffered(1)))
    except Exception:
        # Fallback if single-buffering of resident blocks is rejected by this backend.
        out_padded = jax.block_until_ready(call(None))

    return out_padded[:B, :action_numbers]


def init_params(key, feature_numbers, neuron_nums, action_numbers,
                *, compute_dtype=jnp.bfloat16):
    """Mirrors Net.__init__: weights ~ Normal(0, 0.1); biases use PyTorch Linear default
    U(-1/sqrt(fan_in), +). Weights stored transposed (in, out) for y = x @ W + b.
    Output dims are zero-padded to multiples of 128 (lane-dense); fc1's input dim stays
    unpadded. Biases are stacked into a single (3, W) f32 array."""
    Hp = _round_up(neuron_nums, LANE)
    Ap = _round_up(action_numbers, LANE)
    Wb = max(Hp, Ap)
    ks = jax.random.split(key, 6)

    def w(k, fan_in, fan_out, rows, cols):
        wt = (0.1 * jax.random.normal(k, (fan_in, fan_out))).astype(compute_dtype)
        return jnp.zeros((rows, cols), compute_dtype).at[:fan_in, :fan_out].set(wt)

    def bias_row(k, fan_in, fan_out):
        bound = 1.0 / (float(fan_in) ** 0.5)
        bt = jax.random.uniform(k, (fan_out,), minval=-bound, maxval=bound,
                                dtype=jnp.float32)
        return jnp.zeros((Wb,), jnp.float32).at[:fan_out].set(bt)

    b = jnp.stack([
        bias_row(ks[1], feature_numbers, neuron_nums),   # fc1 bias
        bias_row(ks[3], neuron_nums, neuron_nums),       # fc2 bias
        bias_row(ks[5], neuron_nums, action_numbers),    # out bias
    ])

    return {
        "w1": w(ks[0], feature_numbers, neuron_nums, feature_numbers, Hp),  # K unpadded
        "w2": w(ks[2], neuron_nums, neuron_nums, Hp, Hp),
        "w3": w(ks[4], neuron_nums, action_numbers, Hp, Ap),
        "b": b,
    }


def reference_forward(x, params, action_numbers):
    """Pure-JAX reference with the same bf16-input / f32-accumulate numerics."""
    cd = params["w1"].dtype
    w1, w2, w3, b = params["w1"], params["w2"], params["w3"], params["b"]
    Hp, Ap = w1.shape[1], w3.shape[1]
    h1 = _leaky_relu(jnp.dot(x.astype(cd), w1,
                             preferred_element_type=jnp.float32) + b[0:1, :Hp])
    h2 = _leaky_relu(jnp.dot(h1.astype(cd), w2,
                             preferred_element_type=jnp.float32) + b[1:2, :Hp])
    y = jnp.dot(h2.astype(cd), w3,
                preferred_element_type=jnp.float32) + b[2:3, :Ap]
    return y[:, :action_numbers]


if __name__ == "__main__":
    key = jax.random.PRNGKey(0)
    k_x, k_p = jax.random.split(key)

    # Small shapes consistent with the module.
    batch = 64
    feature_numbers = 16     # input features
    neuron_nums = 32         # config['neuron_nums']
    action_numbers = 4       # number of actions

    x = jax.random.normal(k_x, (batch, feature_numbers), dtype=jnp.float32)
    params = init_params(k_p, feature_numbers, neuron_nums, action_numbers)

    out = jax.block_until_ready(net_forward(x, params, action_numbers))

    ref = reference_forward(x, params, action_numbers)
    assert out.shape == (batch, action_numbers)
    assert jnp.allclose(out, ref, atol=1e-4, rtol=1e-4), "mismatch vs JAX reference"

    print("KERNEL_OK")
</pallas_src>

<mosaic_0001>
module attributes {stable_mosaic.version = 11 : i64} {
  func.func @mlp_kernel(%arg0: i32, %arg1: memref<64x16xf32, #tpu.memory_space<vmem>>, %arg2: memref<16x128xbf16, #tpu.memory_space<vmem>>, %arg3: memref<128x128xbf16, #tpu.memory_space<vmem>>, %arg4: memref<128x128xbf16, #tpu.memory_space<vmem>>, %arg5: memref<3x128xf32, #tpu.memory_space<vmem>>, %arg6: memref<64x128xf32, #tpu.memory_space<vmem>>) attributes {dimension_semantics = [#tpu.dimension_semantics<parallel>], iteration_bounds = array<i64: 1>, scalar_prefetch = 0 : i64, scratch_operands = 0 : i64, tpu.core_type = #tpu.core_type<tc>, window_params = [{transform_indices = @transform_0, window_bounds = array<i64: 64, 16>}, {pipeline_mode = #tpu.pipeline_mode<synchronous>, transform_indices = @transform_1, window_bounds = array<i64: 16, 128>}, {pipeline_mode = #tpu.pipeline_mode<synchronous>, transform_indices = @transform_2, window_bounds = array<i64: 128, 128>}, {pipeline_mode = #tpu.pipeline_mode<synchronous>, transform_indices = @transform_3, window_bounds = array<i64: 128, 128>}, {pipeline_mode = #tpu.pipeline_mode<synchronous>, transform_indices = @transform_4, window_bounds = array<i64: 3, 128>}, {transform_indices = @transform_5, window_bounds = array<i64: 64, 128>}]} {
    %c0 = arith.constant 0 : index
    %c0_0 = arith.constant 0 : index
    %0 = vector.load %arg1[%c0, %c0_0] : memref<64x16xf32, #tpu.memory_space<vmem>>, vector<64x16xf32>
    %1 = arith.truncf %0 : vector<64x16xf32> to vector<64x16xbf16>
    %c0_1 = arith.constant 0 : index
    %c0_2 = arith.constant 0 : index
    %2 = vector.load %arg2[%c0_1, %c0_2] : memref<16x128xbf16, #tpu.memory_space<vmem>>, vector<16x128xbf16>
    %cst = arith.constant dense<0.000000e+00> : vector<64x128xf32>
    %3 = tpu.matmul %1, %2, %cst {dimension_numbers = #tpu.dot_dimension_numbers<[1], [0], [0], [1], [0, 0, 1, 1], [], []>} : vector<64x16xbf16>, vector<16x128xbf16>, vector<64x128xf32> -> vector<64x128xf32>
    %c0_3 = arith.constant 0 : index
    %c0_4 = arith.constant 0 : index
    %4 = vector.load %arg5[%c0_3, %c0_4] : memref<3x128xf32, #tpu.memory_space<vmem>>, vector<1x128xf32>
    %5 = vector.broadcast %4 : vector<1x128xf32> to vector<64x128xf32>
    %6 = arith.addf %3, %5 : vector<64x128xf32>
    %cst_5 = arith.constant 0.000000e+00 : f32
    %7 = vector.broadcast %cst_5 : f32 to vector<64x128xf32>
    %8 = arith.cmpf oge, %6, %7 : vector<64x128xf32>
    %cst_6 = arith.constant 0.00999999977 : f32
    %9 = vector.broadcast %cst_6 : f32 to vector<64x128xf32>
    %10 = arith.mulf %9, %6 : vector<64x128xf32>
    %11 = arith.select %8, %6, %10 : vector<64x128xi1>, vector<64x128xf32>
    %12 = arith.truncf %11 : vector<64x128xf32> to vector<64x128xbf16>
    %c0_7 = arith.constant 0 : index
    %c0_8 = arith.constant 0 : index
    %13 = vector.load %arg3[%c0_7, %c0_8] : memref<128x128xbf16, #tpu.memory_space<vmem>>, vector<128x128xbf16>
    %cst_9 = arith.constant dense<0.000000e+00> : vector<64x128xf32>
    %14 = tpu.matmul %12, %13, %cst_9 {dimension_numbers = #tpu.dot_dimension_numbers<[1], [0], [0], [1], [0, 0, 1, 1], [], []>} : vector<64x128xbf16>, vector<128x128xbf16>, vector<64x128xf32> -> vector<64x128xf32>
    %c1 = arith.constant 1 : index
    %c0_10 = arith.constant 0 : index
    %15 = vector.load %arg5[%c1, %c0_10] : memref<3x128xf32, #tpu.memory_space<vmem>>, vector<1x128xf32>
    %16 = vector.broadcast %15 : vector<1x128xf32> to vector<64x128xf32>
    %17 = arith.addf %14, %16 : vector<64x128xf32>
    %cst_11 = arith.constant 0.000000e+00 : f32
    %18 = vector.broadcast %cst_11 : f32 to vector<64x128xf32>
    %19 = arith.cmpf oge, %17, %18 : vector<64x128xf32>
    %cst_12 = arith.constant 0.00999999977 : f32
    %20 = vector.broadcast %cst_12 : f32 to vector<64x128xf32>
    %21 = arith.mulf %20, %17 : vector<64x128xf32>
    %22 = arith.select %19, %17, %21 : vector<64x128xi1>, vector<64x128xf32>
    %23 = arith.truncf %22 : vector<64x128xf32> to vector<64x128xbf16>
    %c0_13 = arith.constant 0 : index
    %c0_14 = arith.constant 0 : index
    %24 = vector.load %arg4[%c0_13, %c0_14] : memref<128x128xbf16, #tpu.memory_space<vmem>>, vector<128x128xbf16>
    %cst_15 = arith.constant dense<0.000000e+00> : vector<64x128xf32>
    %25 = tpu.matmul %23, %24, %cst_15 {dimension_numbers = #tpu.dot_dimension_numbers<[1], [0], [0], [1], [0, 0, 1, 1], [], []>} : vector<64x128xbf16>, vector<128x128xbf16>, vector<64x128xf32> -> vector<64x128xf32>
    %c2 = arith.constant 2 : index
    %c0_16 = arith.constant 0 : index
    %26 = vector.load %arg5[%c2, %c0_16] : memref<3x128xf32, #tpu.memory_space<vmem>>, vector<1x128xf32>
    %27 = vector.broadcast %26 : vector<1x128xf32> to vector<64x128xf32>
    %28 = arith.addf %25, %27 : vector<64x128xf32>
    %c0_17 = arith.constant 0 : index
    %c0_18 = arith.constant 0 : index
    %29 = vector.load %arg6[%c0_17, %c0_18] : memref<64x128xf32, #tpu.memory_space<vmem>>, vector<64x128xf32>
    tpu.vector_store %arg6[%c0_17, %c0_18], %28 {strides = array<i32>} : memref<64x128xf32, #tpu.memory_space<vmem>>, vector<64x128xf32>,
    return
  }
  func.func @transform_0(%arg0: i32) -> (i32, i32) {
    %c0_i32 = arith.constant 0 : i32
    %c0_i32_0 = arith.constant 0 : i32
    return %arg0, %c0_i32 : i32, i32
  }
  func.func @transform_1(%arg0: i32) -> (i32, i32) {
    %c0_i32 = arith.constant 0 : i32
    %c0_i32_0 = arith.constant 0 : i32
    %c0_i32_1 = arith.constant 0 : i32
    return %c0_i32, %c0_i32_0 : i32, i32
  }
  func.func @transform_2(%arg0: i32) -> (i32, i32) {
    %c0_i32 = arith.constant 0 : i32
    %c0_i32_0 = arith.constant 0 : i32
    %c0_i32_1 = arith.constant 0 : i32
    return %c0_i32, %c0_i32_0 : i32, i32
  }
  func.func @transform_3(%arg0: i32) -> (i32, i32) {
    %c0_i32 = arith.constant 0 : i32
    %c0_i32_0 = arith.constant 0 : i32
    %c0_i32_1 = arith.constant 0 : i32
    return %c0_i32, %c0_i32_0 : i32, i32
  }
  func.func @transform_4(%arg0: i32) -> (i32, i32) {
    %c0_i32 = arith.constant 0 : i32
    %c0_i32_0 = arith.constant 0 : i32
    %c0_i32_1 = arith.constant 0 : i32
    return %c0_i32, %c0_i32_0 : i32, i32
  }
  func.func @transform_5(%arg0: i32) -> (i32, i32) {
    %c0_i32 = arith.constant 0 : i32
    %c0_i32_0 = arith.constant 0 : i32
    return %arg0, %c0_i32 : i32, i32
  }
}

module attributes {stable_mosaic.version = 11 : i64} {
  func.func @mlp_kernel(%arg0: i32, %arg1: memref<64x16xf32, #tpu.memory_space<vmem>>, %arg2: memref<16x128xbf16, #tpu.memory_space<vmem>>, %arg3: memref<128x128xbf16, #tpu.memory_space<vmem>>, %arg4: memref<128x128xbf16, #tpu.memory_space<vmem>>, %arg5: memref<3x128xf32, #tpu.memory_space<vmem>>, %arg6: memref<64x128xf32, #tpu.memory_space<vmem>>) attributes {dimension_semantics = [#tpu.dimension_semantics<parallel>], iteration_bounds = array<i64: 1>, scalar_prefetch = 0 : i64, scratch_operands = 0 : i64, tpu.core_type = #tpu.core_type<tc>, window_params = [{transform_indices = @transform_0, window_bounds = array<i64: 64, 16>}, {pipeline_mode = #tpu.pipeline_mode<synchronous>, transform_indices = @transform_1, window_bounds = array<i64: 16, 128>}, {pipeline_mode = #tpu.pipeline_mode<synchronous>, transform_indices = @transform_2, window_bounds = array<i64: 128, 128>}, {pipeline_mode = #tpu.pipeline_mode<synchronous>, transform_indices = @transform_3, window_bounds = array<i64: 128, 128>}, {pipeline_mode = #tpu.pipeline_mode<synchronous>, transform_indices = @transform_4, window_bounds = array<i64: 3, 128>}, {transform_indices = @transform_5, window_bounds = array<i64: 64, 128>}]} {
    %c0 = arith.constant 0 : index
    %c0_0 = arith.constant 0 : index
    %0 = vector.load %arg1[%c0, %c0_0] : memref<64x16xf32, #tpu.memory_space<vmem>>, vector<64x16xf32>
    %1 = arith.truncf %0 : vector<64x16xf32> to vector<64x16xbf16>
    %c0_1 = arith.constant 0 : index
    %c0_2 = arith.constant 0 : index
    %2 = vector.load %arg2[%c0_1, %c0_2] : memref<16x128xbf16, #tpu.memory_space<vmem>>, vector<16x128xbf16>
    %cst = arith.constant dense<0.000000e+00> : vector<64x128xf32>
    %3 = tpu.matmul %1, %2, %cst {dimension_numbers = #tpu.dot_dimension_numbers<[1], [0], [0], [1], [0, 0, 1, 1], [], []>} : vector<64x16xbf16>, vector<16x128xbf16>, vector<64x128xf32> -> vector<64x128xf32>
    %c0_3 = arith.constant 0 : index
    %c0_4 = arith.constant 0 : index
    %4 = vector.load %arg5[%c0_3, %c0_4] : memref<3x128xf32, #tpu.memory_space<vmem>>, vector<1x128xf32>
    %5 = vector.broadcast %4 : vector<1x128xf32> to vector<64x128xf32>
    %6 = arith.addf %3, %5 : vector<64x128xf32>
    %cst_5 = arith.constant 0.000000e+00 : f32
    %7 = vector.broadcast %cst_5 : f32 to vector<64x128xf32>
    %8 = arith.cmpf oge, %6, %7 : vector<64x128xf32>
    %cst_6 = arith.constant 0.00999999977 : f32
    %9 = vector.broadcast %cst_6 : f32 to vector<64x128xf32>
    %10 = arith.mulf %9, %6 : vector<64x128xf32>
    %11 = arith.select %8, %6, %10 : vector<64x128xi1>, vector<64x128xf32>
    %12 = arith.truncf %11 : vector<64x128xf32> to vector<64x128xbf16>
    %c0_7 = arith.constant 0 : index
    %c0_8 = arith.constant 0 : index
    %13 = vector.load %arg3[%c0_7, %c0_8] : memref<128x128xbf16, #tpu.memory_space<vmem>>, vector<128x128xbf16>
    %cst_9 = arith.constant dense<0.000000e+00> : vector<64x128xf32>
    %14 = tpu.matmul %12, %13, %cst_9 {dimension_numbers = #tpu.dot_dimension_numbers<[1], [0], [0], [1], [0, 0, 1, 1], [], []>} : vector<64x128xbf16>, vector<128x128xbf16>, vector<64x128xf32> -> vector<64x128xf32>
    %c1 = arith.constant 1 : index
    %c0_10 = arith.constant 0 : index
    %15 = vector.load %arg5[%c1, %c0_10] : memref<3x128xf32, #tpu.memory_space<vmem>>, vector<1x128xf32>
    %16 = vector.broadcast %15 : vector<1x128xf32> to vector<64x128xf32>
    %17 = arith.addf %14, %16 : vector<64x128xf32>
    %cst_11 = arith.constant 0.000000e+00 : f32
    %18 = vector.broadcast %cst_11 : f32 to vector<64x128xf32>
    %19 = arith.cmpf oge, %17, %18 : vector<64x128xf32>
    %cst_12 = arith.constant 0.00999999977 : f32
    %20 = vector.broadcast %cst_12 : f32 to vector<64x128xf32>
    %21 = arith.mulf %20, %17 : vector<64x128xf32>
    %22 = arith.select %19, %17, %21 : vector<64x128xi1>, vector<64x128xf32>
    %23 = arith.truncf %22 : vector<64x128xf32> to vector<64x128xbf16>
    %c0_13 = arith.constant 0 : index
    %c0_14 = arith.constant 0 : index
    %24 = vector.load %arg4[%c0_13, %c0_14] : memref<128x128xbf16, #tpu.memory_space<vmem>>, vector<128x128xbf16>
    %cst_15 = arith.constant dense<0.000000e+00> : vector<64x128xf32>
    %25 = tpu.matmul %23, %24, %cst_15 {dimension_numbers = #tpu.dot_dimension_numbers<[1], [0], [0], [1], [0, 0, 1, 1], [], []>} : vector<64x128xbf16>, vector<128x128xbf16>, vector<64x128xf32> -> vector<64x128xf32>
    %c2 = arith.constant 2 : index
    %c0_16 = arith.constant 0 : index
    %26 = vector.load %arg5[%c2, %c0_16] : memref<3x128xf32, #tpu.memory_space<vmem>>, vector<1x128xf32>
    %27 = vector.broadcast %26 : vector<1x128xf32> to vector<64x128xf32>
    %28 = arith.addf %25, %27 : vector<64x128xf32>
    %c0_17 = arith.constant 0 : index
    %c0_18 = arith.constant 0 : index
    %29 = vector.load %arg6[%c0_17, %c0_18] : memref<64x128xf32, #tpu.memory_space<vmem>>, vector<64x128xf32>
    tpu.vector_store %arg6[%c0_17, %c0_18], %28 {strides = array<i32>} : memref<64x128xf32, #tpu.memory_space<vmem>>, vector<64x128xf32>,
    return
  }
  func.func @transform_0(%arg0: i32) -> (i32, i32) {
    %c0_i32 = arith.constant 0 : i32
    %c0_i32_0 = arith.constant 0 : i32
    return %arg0, %c0_i32 : i32, i32
  }
  func.func @transform_1(%arg0: i32) -> (i32, i32) {
    %c0_i32 = arith.constant 0 : i32
    %c0_i32_0 = arith.constant 0 : i32
    %c0_i32_1 = arith.constant 0 : i32
    return %c0_i32, %c0_i32_0 : i32, i32
  }
  func.func @transform_2(%arg0: i32) -> (i32, i32) {
    %c0_i32 = arith.constant 0 : i32
    %c0_i32_0 = arith.constant 0 : i32
    %c0_i32_1 = arith.constant 0 : i32
    return %c0_i32, %c0_i32_0 : i32, i32
  }
  func.func @transform_3(%arg0: i32) -> (i32, i32) {
    %c0_i32 = arith.constant 0 : i32
    %c0_i32_0 = arith.constant 0 : i32
    %c0_i32_1 = arith.constant 0 : i32
    return %c0_i32, %c0_i32_0 : i32, i32
  }
  func.func @transform_4(%arg0: i32) -> (i32, i32) {
    %c0_i32 = arith.constant 0 : i32
    %c0_i32_0 = arith.constant 0 : i32
    %c0_i32_1 = arith.constant 0 : i32
    return %c0_i32, %c0_i32_0 : i32, i32
  }
  func.func @transform_5(%arg0: i32) -> (i32, i32) {
    %c0_i32 = arith.constant 0 : i32
    %c0_i32_0 = arith.constant 0 : i32
    return %arg0, %c0_i32 : i32, i32
  }
}

</mosaic_0001>

<bundles_post_ra>
// kernel: tpu_custom_call.1
= control target key start
LH: loop header
LB: loop body
LE: loop exit
PB: predicated region body
PF: predicated region fallthrough
CT: control target
= control target key end

     0   :  { %10 = vsyncpa [#allocation3], 0  ;;  %s772_s0 = inlined_call_operand.vmem [shape: f32[64,16], index: 0, kind: input, shape index: {}]   ;;  %s773_s1 = inlined_call_operand.vmem [shape: bf16[16,128], index: 1, kind: input, shape index: {}]   ;;  %s774_s2 = inlined_call_operand.vmem [shape: bf16[128,128], index: 2, kind: input, shape index: {}]   ;;  %s775_s3 = inlined_call_operand.hbm [shape: bf16[128,128], index: 3, kind: input, shape index: {}]   ;;  %s776_s4 = inlined_call_operand.vmem [shape: f32[3,128], index: 4, kind: input, shape index: {}]   ;;  %s777_s5 = inlined_call_operand.hbm [shape: f32[64,128], index: 5, kind: output, shape index: {}]  }
   0x1   :  { %11 = vsyncpa [#allocation4], 0  ;;  %s666_s18 = smov [#allocation2]  }
   0x2   :  { %s23_s19 = sshll.u32 %s666_s18, 4  ;;  %s24_s19 = int_to_ptr.vmem [resolvable:$true] %s23_s19 }
   0x3   :  { %s630_s20 = scalar_lea.vmem %s24_s19, 1024  ;;  %p635_p1 = scmp.lt.s32.totalorder %s24_s19, %s24_s19 }
   0x4   :  { %p631_p0 = scmp.ne.s32.totalorder %s24_s19, %s630_s20  ;;  %p636_p2 = scmp.lt.s32.totalorder %s630_s20, %s630_s20 }
   0x6   :  { %p637_p3 = por %p636_p2, %p635_p1 }
   0x8   :  { %p638_p4 = pnand %p637_p3, %p631_p0 }
   0xa   :  { %641 = shalt.err (!%p638_p4)
}
   0xb   :  { %s667_s21 = smov 64   ;;  %s668_s22 = smov 4  }
   0xc   :  { %29 = dma.hbm_to_vmem [thread:$0]  %s775_s3, 1024, %s24_s19, [#allocation3], %s667_s21, %s667_s21, %s668_s22  }
   0xd   :  { %662 = dma.done.wait [#allocation3], 1024  }
   0xe   :  { %663 = vsyncadd [#allocation3], 4294966272  ;;  %v605_v0 = vld [vmem:[%s773_s1] sm:$0xff]   ;;  %v37_v2 = vld [vmem:[%s772_s0 + $0x8] sm:$0xff]  ;;  %vm61_vm0 = vcmask 130048   ;;  %s669_s9 = smov [#allocation5]  }
   0xf   :  { %v36_v1 = vld [vmem:[%s772_s0] sm:$0xff]  ;;  %v38_v3 = vld [vmem:[%s772_s0 + $0x10] sm:$0xff]  ;;  %541 = vmatprep.subr.bf16.mxu0 %v605_v0  ;;  %v39_v5 = vld [vmem:[%s772_s0 + $0x18] sm:$0xff]  ;;  %s476_s10 = sshll.u32 %s669_s9, 4  ;;  %s477_s10 = int_to_ptr.vmem [resolvable:$true] %s476_s10 }
  0x10   :  { %v44_v4 = vpack.c.bf16 %v37_v2, %v36_v1  ;;  %v40_v6 = vld [vmem:[%s772_s0 + $0x20] sm:$0xff]  ;;  %v41_v7 = vld [vmem:[%s772_s0 + $0x28] sm:$0xff]  ;;  %542 = vmatpush3.bf16.msra.mxu0 %v605_v0  ;;  %v45_v8 = vpack.c.bf16 %v39_v5, %v38_v3  ;;  %v606_v10 = vld [vmem:[%s774_s2 + $0x38] sm:$0xff]   ;;  %p647_p6 = scmp.lt.s32.totalorder %s477_s10, %s477_s10 }
  0x11   :  { %v46_v9 = vpack.c.bf16 %v41_v7, %v40_v6  ;;  %v607_v11 = vld [vmem:[%s774_s2 + $0x30] sm:$0xff]   ;;  %551 = vmatprep.subr.bf16.mxu1 %v606_v10  ;;  %v43_v13 = vld [vmem:[%s772_s0 + $0x38] sm:$0xff]  ;;  %v608_v14 = vld [vmem:[%s774_s2 + $0x28] sm:$0xff]  }
  0x12   :  { %543 = vmatprep.mubr.msk.bf16.mxu0 %vm61_vm0, %v44_v4  ;;  %v42_v12 = vld [vmem:[%s772_s0 + $0x30] sm:$0xff]  ;;  %552 = vmatpush3.bf16.msra.mxu1 %v606_v10  ;;  %v609_v16 = vld [vmem:[%s774_s2 + $0x20] sm:$0xff]   ;;  %v610_v17 = vld [vmem:[%s774_s2 + $0x18] sm:$0xff]  }
  0x13   :  { %544 = vmatmul.mubr.msk.bf16.vlgmr.msra.gmra.mxu0 %vm61_vm0, %v45_v8  ;;  %553 = vmatprep.subr.bf16.mxu1 %v607_v11  ;;  %v47_v15 = vpack.c.bf16 %v43_v13, %v42_v12  ;;  %v611_v18 = vld [vmem:[%s774_s2 + $0x10] sm:$0xff]   ;;  %v612_v19 = vld [vmem:[%s774_s2 + $0x8] sm:$0xff]   ;;  %v613_v20 = vld [vmem:[%s774_s2] sm:$0xff]  }
  0x14   :  { %547 = vmatprep.mubr.msk.bf16.mxu0 %vm61_vm0, %v46_v9  ;;  %v614_v21 = vld [vmem:[#allocation2 + $0x38] sm:$0xff]   ;;  %v615_v22 = vld [vmem:[#allocation2 + $0x30] sm:$0xff]   ;;  %v616_v23 = vld [vmem:[#allocation2 + $0x28] sm:$0xff]  }
  0x15   :  { %575 = vmatprep.subr.bf16.mxu0 %v614_v21  ;;  %v617_v24 = vld [vmem:[#allocation2 + $0x20] sm:$0xff]   ;;  %v618_v25 = vld [vmem:[#allocation2 + $0x18] sm:$0xff]   ;;  %v619_v63 = vld [vmem:[#allocation2 + $0x10] sm:$0xff]  }
  0x16   :  { %554 = vmatpush3.bf16.msra.mxu1 %v607_v11  ;;  %576 = vmatpush3.bf16.msra.mxu0 %v614_v21  ;;  %v488_v27 = vld [vmem:[%s776_s4] ss:$0 sm:$0xff]  ;;  %v620_v0 = vld [vmem:[#allocation2 + $0x8] sm:$0xff]   ;;  %v494_v3 = vld [vmem:[%s776_s4 + $0x1] ss:$0 sm:$0xff] }
  0x17   :  { %555 = vmatprep.subr.bf16.mxu1 %v608_v14  ;;  %577 = vmatprep.subr.bf16.mxu0 %v615_v22  ;;  %v621_v1 = vld [vmem:[#allocation2] sm:$0xff]  }
  0x1a   :  { %556 = vmatpush3.bf16.msra.mxu1 %v608_v14  ;;  %578 = vmatpush3.bf16.msra.mxu0 %v615_v22 }
  0x1b   :  { %548 = vmatmul.mubr.msk.bf16.gmra.mxu0 %vm61_vm0, %v47_v15  ;;  %557 = vmatprep.subr.bf16.mxu1 %v609_v16 }
  0x1c   :  { %579 = vmatprep.subr.bf16.mxu0 %v616_v23 }
  0x1e   :  { %558 = vmatpush3.bf16.msra.mxu1 %v609_v16  ;;  %580 = vmatpush3.bf16.msra.mxu0 %v616_v23 }
  0x1f   :  { %559 = vmatprep.subr.bf16.mxu1 %v610_v17  ;;  %581 = vmatprep.subr.bf16.mxu0 %v617_v24 }
  0x22   :  { %560 = vmatpush3.bf16.msra.mxu1 %v610_v17  ;;  %582 = vmatpush3.bf16.msra.mxu0 %v617_v24 }
  0x23   :  { %561 = vmatprep.subr.bf16.mxu1 %v611_v18  ;;  %583 = vmatprep.subr.bf16.mxu0 %v618_v25 }
  0x26   :  { %562 = vmatpush3.bf16.msra.mxu1 %v611_v18  ;;  %584 = vmatpush3.bf16.msra.mxu0 %v618_v25 }
  0x27   :  { %563 = vmatprep.subr.bf16.mxu1 %v612_v19  ;;  %585 = vmatprep.subr.bf16.mxu0 %v619_v63 }
  0x2a   :  { %564 = vmatpush3.bf16.msra.mxu1 %v612_v19  ;;  %586 = vmatpush3.bf16.msra.mxu0 %v619_v63 }
  0x2b   :  { %565 = vmatprep.subr.bf16.mxu1 %v613_v20  ;;  %587 = vmatprep.subr.bf16.mxu0 %v620_v0 }
  0x2e   :  { %566 = vmatpush3.bf16.msra.mxu1 %v613_v20  ;;  %588 = vmatpush3.bf16.msra.mxu0 %v620_v0 }
  0x2f   :  { %589 = vmatprep.subr.bf16.mxu0 %v621_v1 }
  0x32   :  { %590 = vmatpush3.bf16.msra.mxu0 %v621_v1 }
  0xd3   :  { %v545_v26 = vpop.f32.mrf.mxu0 }
  0xd4   :  { %v117_v30 = vadd.f32 %v545_v26, %v488_v27 }
  0xd5   :  { %v108_v28 = vpop.f32.mrf.mxu0 }
  0xd6   :  { %v109_v29 = vadd.f32 %v488_v27, %v108_v28  ;;  %v149_v37 = vmul.f32 0.01, %v117_v30  ;;  %vm141_vm3 = vcmp.ge.f32.partialorder %v117_v30, 0.0 }
  0xd7   :  { %v546_v31 = vpop.f32.mrf.mxu0 }
  0xd8   :  { %v120_v32 = vadd.f32 %v546_v31, %v488_v27  ;;  %v147_v34 = vmul.f32 0.01, %v109_v29  ;;  %vm139_vm2 = vcmp.ge.f32.partialorder %v109_v29, 0.0  ;;  %v157_v48 = vsel %vm141_vm3, %v117_v30, %v149_v37 }
  0xd9   :  { %v111_v33 = vpop.f32.mrf.mxu0 }
  0xda   :  { %vm142_vm1 = vcmp.ge.f32.partialorder %v120_v32, 0.0  ;;  %v150_v35 = vmul.f32 0.01, %v120_v32  ;;  %v112_v36 = vadd.f32 %v488_v27, %v111_v33  ;;  %v155_v43 = vsel %vm139_vm2, %v109_v29, %v147_v34 }
  0xdb   :  { %v549_v38 = vpop.f32.mrf.mxu0 }
  0xdc   :  { %v148_v39 = vmul.f32 0.01, %v112_v36  ;;  %vm140_vm4 = vcmp.ge.f32.partialorder %v112_v36, 0.0  ;;  %v158_v41 = vsel %vm142_vm1, %v120_v32, %v150_v35  ;;  %v133_v45 = vadd.f32 %v549_v38, %v488_v27 }
  0xdd   :  { %v124_v40 = vpop.f32.mrf.mxu0  ;;  %v164_v50 = vpack.c.bf16 %v158_v41, %v157_v48 }
  0xde   :  { %v125_v42 = vadd.f32 %v488_v27, %v124_v40  ;;  %v156_v44 = vsel %vm140_vm4, %v112_v36, %v148_v39  ;;  %v153_v55 = vmul.f32 0.01, %v133_v45  ;;  %vm145_vm7 = vcmp.ge.f32.partialorder %v133_v45, 0.0  ;;  %v503_v39 = vld [vmem:[%s776_s4 + $0x2] ss:$0 sm:$0xff]  ;;  %s642_s4 = scalar_lea.vmem %s477_s10, 1024 }
  0xdf   :  { %v550_v46 = vpop.f32.mrf.mxu0  ;;  %v163_v47 = vpack.c.bf16 %v156_v44, %v155_v43  ;;  %p643_p5 = scmp.ne.s32.totalorder %s477_s10, %s642_s4  ;;  %p648_p7 = scmp.lt.s32.totalorder %s642_s4, %s642_s4 }
  0xe0   :  { %v136_v49 = vadd.f32 %v550_v46, %v488_v27  ;;  %v151_v52 = vmul.f32 0.01, %v125_v42  ;;  %vm143_vm6 = vcmp.ge.f32.partialorder %v125_v42, 0.0  ;;  %v161_v61 = vsel %vm145_vm7, %v133_v45, %v153_v55 }
  0xe1   :  { %v127_v51 = vpop.f32.mrf.mxu0  ;;  %567 = vmatprep.mubr.bf16.mxu1 %v163_v47  ;;  %p649_p8 = por %p648_p7, %p647_p6 }
  0xe2   :  { %vm146_vm5 = vcmp.ge.f32.partialorder %v136_v49, 0.0  ;;  %v154_v53 = vmul.f32 0.01, %v136_v49  ;;  %v128_v54 = vadd.f32 %v488_v27, %v127_v51  ;;  %568 = vmatmul.mubr.bf16.vlgmr.msra.gmra.mxu1 %v164_v50  ;;  %v159_v58 = vsel %vm143_vm6, %v125_v42, %v151_v52 }
  0xe3   :  { %p650_p9 = pnand %p649_p8, %p643_p5 }
  0xe4   :  { %vm144_vm8 = vcmp.ge.f32.partialorder %v128_v54, 0.0  ;;  %v152_v56 = vmul.f32 0.01, %v128_v54  ;;  %v162_v57 = vsel %vm146_vm5, %v136_v49, %v154_v53 }
  0xe5   :  { %v166_v62 = vpack.c.bf16 %v162_v57, %v161_v61 }
  0xe6   :  { %v160_v59 = vsel %vm144_vm8, %v128_v54, %v152_v56 }
  0xe7   :  { %v165_v60 = vpack.c.bf16 %v160_v59, %v159_v58 }
  0xe9   :  { %571 = vmatprep.mubr.bf16.mxu1 %v165_v60 }
  0xea   :  { %572 = vmatmul.mubr.bf16.gmra.mxu1 %v166_v62 }
 0x1a2   :  { %v569_v2 = vpop.f32.mrf.mxu1 }
 0x1a3   :  { %v279_v6 = vadd.f32 %v569_v2, %v494_v3 }
 0x1a4   :  { %v270_v4 = vpop.f32.mrf.mxu1 }
 0x1a5   :  { %v271_v5 = vadd.f32 %v494_v3, %v270_v4  ;;  %v311_v13 = vmul.f32 0.01, %v279_v6  ;;  %vm303_vm11 = vcmp.ge.f32.partialorder %v279_v6, 0.0 }
 0x1a6   :  { %v570_v7 = vpop.f32.mrf.mxu1 }
 0x1a7   :  { %v282_v8 = vadd.f32 %v570_v7, %v494_v3  ;;  %v309_v10 = vmul.f32 0.01, %v271_v5  ;;  %vm301_vm10 = vcmp.ge.f32.partialorder %v271_v5, 0.0  ;;  %v319_v21 = vsel %vm303_vm11, %v279_v6, %v311_v13 }
 0x1a8   :  { %v273_v9 = vpop.f32.mrf.mxu1 }
 0x1a9   :  { %vm304_vm9 = vcmp.ge.f32.partialorder %v282_v8, 0.0  ;;  %v312_v11 = vmul.f32 0.01, %v282_v8  ;;  %v274_v12 = vadd.f32 %v494_v3, %v273_v9  ;;  %v317_v19 = vsel %vm301_vm10, %v271_v5, %v309_v10 }
 0x1aa   :  { %v573_v14 = vpop.f32.mrf.mxu1 }
 0x1ab   :  { %vm302_vm12 = vcmp.ge.f32.partialorder %v274_v12, 0.0  ;;  %v310_v15 = vmul.f32 0.01, %v274_v12  ;;  %v320_v16 = vsel %vm304_vm9, %v282_v8, %v312_v11  ;;  %v295_v22 = vadd.f32 %v573_v14, %v494_v3 }
 0x1ac   :  { %v286_v17 = vpop.f32.mrf.mxu1  ;;  %v326_v25 = vpack.c.bf16 %v320_v16, %v319_v21 }
 0x1ad   :  { %v287_v18 = vadd.f32 %v494_v3, %v286_v17  ;;  %v318_v20 = vsel %vm302_vm12, %v274_v12, %v310_v15  ;;  %v315_v31 = vmul.f32 0.01, %v295_v22  ;;  %vm307_vm15 = vcmp.ge.f32.partialorder %v295_v22, 0.0 }
 0x1ae   :  { %v574_v23 = vpop.f32.mrf.mxu1  ;;  %v325_v24 = vpack.c.bf16 %v318_v20, %v317_v19 }
 0x1af   :  { %v298_v26 = vadd.f32 %v574_v23, %v494_v3  ;;  %v313_v28 = vmul.f32 0.01, %v287_v18  ;;  %vm305_vm14 = vcmp.ge.f32.partialorder %v287_v18, 0.0  ;;  %v323_v37 = vsel %vm307_vm15, %v295_v22, %v315_v31 }
 0x1b0   :  { %v289_v27 = vpop.f32.mrf.mxu1  ;;  %591 = vmatprep.mubr.bf16.mxu0 %v325_v24 }
 0x1b1   :  { %vm308_vm13 = vcmp.ge.f32.partialorder %v298_v26, 0.0  ;;  %v316_v29 = vmul.f32 0.01, %v298_v26  ;;  %v290_v30 = vadd.f32 %v494_v3, %v289_v27  ;;  %592 = vmatmul.mubr.bf16.vlgmr.msra.gmra.mxu0 %v326_v25  ;;  %v321_v34 = vsel %vm305_vm14, %v287_v18, %v313_v28 }
 0x1b3   :  { %vm306_vm0 = vcmp.ge.f32.partialorder %v290_v30, 0.0  ;;  %v314_v32 = vmul.f32 0.01, %v290_v30  ;;  %v324_v33 = vsel %vm308_vm13, %v298_v26, %v316_v29 }
 0x1b4   :  { %v328_v38 = vpack.c.bf16 %v324_v33, %v323_v37 }
 0x1b5   :  { %v322_v35 = vsel %vm306_vm0, %v290_v30, %v314_v32 }
 0x1b6   :  { %v327_v36 = vpack.c.bf16 %v322_v35, %v321_v34 }
 0x1b8   :  { %595 = vmatprep.mubr.bf16.mxu0 %v327_v36 }
 0x1b9   :  { %596 = vmatmul.mubr.bf16.gmra.mxu0 %v328_v38 }
 0x271   :  { %v593_v40 = vpop.f32.mrf.mxu0 }
 0x272   :  { %v441_v41 = vadd.f32 %v593_v40, %v503_v39 }
 0x273   :  { %v432_v42 = vpop.f32.mrf.mxu0 }
 0x274   :  { %465 = vst [vmem:[#allocation5 + $0x10] sm:$0xff] %v441_v41  ;;  %v433_v43 = vadd.f32 %v503_v39, %v432_v42 }
 0x275   :  { %v594_v44 = vpop.f32.mrf.mxu0 }
 0x276   :  { %463 = vst [vmem:[#allocation5] sm:$0xff] %v433_v43  ;;  %v444_v45 = vadd.f32 %v594_v44, %v503_v39 }
 0x277   :  { %v435_v46 = vpop.f32.mrf.mxu0 }
 0x278   :  { %466 = vst [vmem:[#allocation5 + $0x18] sm:$0xff] %v444_v45  ;;  %v436_v47 = vadd.f32 %v503_v39, %v435_v46 }
 0x279   :  { %v597_v48 = vpop.f32.mrf.mxu0 }
 0x27a   :  { %464 = vst [vmem:[#allocation5 + $0x8] sm:$0xff] %v436_v47  ;;  %v457_v49 = vadd.f32 %v597_v48, %v503_v39 }
 0x27b   :  { %v448_v50 = vpop.f32.mrf.mxu0 }
 0x27c   :  { %469 = vst [vmem:[#allocation5 + $0x30] sm:$0xff] %v457_v49  ;;  %v449_v51 = vadd.f32 %v503_v39, %v448_v50 }
 0x27d   :  { %v598_v52 = vpop.f32.mrf.mxu0 }
 0x27e   :  { %467 = vst [vmem:[#allocation5 + $0x20] sm:$0xff] %v449_v51  ;;  %v460_v53 = vadd.f32 %v598_v52, %v503_v39 }
 0x27f   :  { %v451_v54 = vpop.f32.mrf.mxu0 }
 0x280   :  { %470 = vst [vmem:[#allocation5 + $0x38] sm:$0xff] %v460_v53  ;;  %v452_v55 = vadd.f32 %v503_v39, %v451_v54 }
 0x282   :  { %468 = vst [vmem:[#allocation5 + $0x28] sm:$0xff] %v452_v55 }
 0x283   :  { %653 = shalt.err (!%p650_p9)
}
 0x284   :  { %s670_s11 = smov 128   ;;  %s671_s12 = smov 8  }
 0x285   :  { %482 = dma.vmem_to_hbm [thread:$0]  %s477_s10, 1024, %s777_s5, [#allocation4], %s670_s11, %s670_s11, %s671_s12  }
 0x286   :  { %664 = dma.done.wait [#allocation4], 1024  }
 0x287   :  { %665 = vsyncadd [#allocation4], 4294966272 }
 0x288   :  { %486 = vsyncpa [#allocation3], 1 }
 0x289   :  { %487 = vsyncpa [#allocation4], 1 }

// kernel: tpu_custom_call.1
= control target key start
LH: loop header
LB: loop body
LE: loop exit
PB: predicated region body
PF: predicated region fallthrough
CT: control target
= control target key end

     0   :  { %10 = vsyncpa [#allocation3], 0  ;;  %s772_s0 = inlined_call_operand.vmem [shape: f32[64,16], index: 0, kind: input, shape index: {}]   ;;  %s773_s1 = inlined_call_operand.vmem [shape: bf16[16,128], index: 1, kind: input, shape index: {}]   ;;  %s774_s2 = inlined_call_operand.vmem [shape: bf16[128,128], index: 2, kind: input, shape index: {}]   ;;  %s775_s3 = inlined_call_operand.hbm [shape: bf16[128,128], index: 3, kind: input, shape index: {}]   ;;  %s776_s4 = inlined_call_operand.vmem [shape: f32[3,128], index: 4, kind: input, shape index: {}]   ;;  %s777_s5 = inlined_call_operand.hbm [shape: f32[64,128], index: 5, kind: output, shape index: {}]  }
   0x1   :  { %11 = vsyncpa [#allocation4], 0  ;;  %s666_s18 = smov [#allocation2]  }
   0x2   :  { %s23_s19 = sshll.u32 %s666_s18, 4  ;;  %s24_s19 = int_to_ptr.vmem [resolvable:$true] %s23_s19 }
   0x3   :  { %s630_s20 = scalar_lea.vmem %s24_s19, 1024  ;;  %p635_p1 = scmp.lt.s32.totalorder %s24_s19, %s24_s19 }
   0x4   :  { %p631_p0 = scmp.ne.s32.totalorder %s24_s19, %s630_s20  ;;  %p636_p2 = scmp.lt.s32.totalorder %s630_s20, %s630_s20 }
   0x6   :  { %p637_p3 = por %p636_p2, %p635_p1 }
   0x8   :  { %p638_p4 = pnand %p637_p3, %p631_p0 }
   0xa   :  { %641 = shalt.err (!%p638_p4)
}
   0xb   :  { %s667_s21 = smov 64   ;;  %s668_s22 = smov 4  }
   0xc   :  { %29 = dma.hbm_to_vmem [thread:$0]  %s775_s3, 1024, %s24_s19, [#allocation3], %s667_s21, %s667_s21, %s668_s22  }
   0xd   :  { %662 = dma.done.wait [#allocation3], 1024  }
   0xe   :  { %663 = vsyncadd [#allocation3], 4294966272  ;;  %v605_v0 = vld [vmem:[%s773_s1] sm:$0xff]   ;;  %v37_v2 = vld [vmem:[%s772_s0 + $0x8] sm:$0xff]  ;;  %vm61_vm0 = vcmask 130048   ;;  %s669_s9 = smov [#allocation5]  }
   0xf   :  { %v36_v1 = vld [vmem:[%s772_s0] sm:$0xff]  ;;  %v38_v3 = vld [vmem:[%s772_s0 + $0x10] sm:$0xff]  ;;  %541 = vmatprep.subr.bf16.mxu0 %v605_v0  ;;  %v39_v5 = vld [vmem:[%s772_s0 + $0x18] sm:$0xff]  ;;  %s476_s10 = sshll.u32 %s669_s9, 4  ;;  %s477_s10 = int_to_ptr.vmem [resolvable:$true] %s476_s10 }
  0x10   :  { %v44_v4 = vpack.c.bf16 %v37_v2, %v36_v1  ;;  %v40_v6 = vld [vmem:[%s772_s0 + $0x20] sm:$0xff]  ;;  %v41_v7 = vld [vmem:[%s772_s0 + $0x28] sm:$0xff]  ;;  %542 = vmatpush3.bf16.msra.mxu0 %v605_v0  ;;  %v45_v8 = vpack.c.bf16 %v39_v5, %v38_v3  ;;  %v606_v10 = vld [vmem:[%s774_s2 + $0x38] sm:$0xff]   ;;  %p647_p6 = scmp.lt.s32.totalorder %s477_s10, %s477_s10 }
  0x11   :  { %v46_v9 = vpack.c.bf16 %v41_v7, %v40_v6  ;;  %v607_v11 = vld [vmem:[%s774_s2 + $0x30] sm:$0xff]   ;;  %551 = vmatprep.subr.bf16.mxu1 %v606_v10  ;;  %v43_v13 = vld [vmem:[%s772_s0 + $0x38] sm:$0xff]  ;;  %v608_v14 = vld [vmem:[%s774_s2 + $0x28] sm:$0xff]  }
  0x12   :  { %543 = vmatprep.mubr.msk.bf16.mxu0 %vm61_vm0, %v44_v4  ;;  %v42_v12 = vld [vmem:[%s772_s0 + $0x30] sm:$0xff]  ;;  %552 = vmatpush3.bf16.msra.mxu1 %v606_v10  ;;  %v609_v16 = vld [vmem:[%s774_s2 + $0x20] sm:$0xff]   ;;  %v610_v17 = vld [vmem:[%s774_s2 + $0x18] sm:$0xff]  }
  0x13   :  { %544 = vmatmul.mubr.msk.bf16.vlgmr.msra.gmra.mxu0 %vm61_vm0, %v45_v8  ;;  %553 = vmatprep.subr.bf16.mxu1 %v607_v11  ;;  %v47_v15 = vpack.c.bf16 %v43_v13, %v42_v12  ;;  %v611_v18 = vld [vmem:[%s774_s2 + $0x10] sm:$0xff]   ;;  %v612_v19 = vld [vmem:[%s774_s2 + $0x8] sm:$0xff]   ;;  %v613_v20 = vld [vmem:[%s774_s2] sm:$0xff]  }
  0x14   :  { %547 = vmatprep.mubr.msk.bf16.mxu0 %vm61_vm0, %v46_v9  ;;  %v614_v21 = vld [vmem:[#allocation2 + $0x38] sm:$0xff]   ;;  %v615_v22 = vld [vmem:[#allocation2 + $0x30] sm:$0xff]   ;;  %v616_v23 = vld [vmem:[#allocation2 + $0x28] sm:$0xff]  }
  0x15   :  { %575 = vmatprep.subr.bf16.mxu0 %v614_v21  ;;  %v617_v24 = vld [vmem:[#allocation2 + $0x20] sm:$0xff]   ;;  %v618_v25 = vld [vmem:[#allocation2 + $0x18] sm:$0xff]   ;;  %v619_v63 = vld [vmem:[#allocation2 + $0x10] sm:$0xff]  }
  0x16   :  { %554 = vmatpush3.bf16.msra.mxu1 %v607_v11  ;;  %576 = vmatpush3.bf16.msra.mxu0 %v614_v21  ;;  %v488_v27 = vld [vmem:[%s776_s4] ss:$0 sm:$0xff]  ;;  %v620_v0 = vld [vmem:[#allocation2 + $0x8] sm:$0xff]   ;;  %v494_v3 = vld [vmem:[%s776_s4 + $0x1] ss:$0 sm:$0xff] }
  0x17   :  { %555 = vmatprep.subr.bf16.mxu1 %v608_v14  ;;  %577 = vmatprep.subr.bf16.mxu0 %v615_v22  ;;  %v621_v1 = vld [vmem:[#allocation2] sm:$0xff]  }
  0x1a   :  { %556 = vmatpush3.bf16.msra.mxu1 %v608_v14  ;;  %578 = vmatpush3.bf16.msra.mxu0 %v615_v22 }
  0x1b   :  { %548 = vmatmul.mubr.msk.bf16.gmra.mxu0 %vm61_vm0, %v47_v15  ;;  %557 = vmatprep.subr.bf16.mxu1 %v609_v16 }
  0x1c   :  { %579 = vmatprep.subr.bf16.mxu0 %v616_v23 }
  0x1e   :  { %558 = vmatpush3.bf16.msra.mxu1 %v609_v16  ;;  %580 = vmatpush3.bf16.msra.mxu0 %v616_v23 }
  0x1f   :  { %559 = vmatprep.subr.bf16.mxu1 %v610_v17  ;;  %581 = vmatprep.subr.bf16.mxu0 %v617_v24 }
  0x22   :  { %560 = vmatpush3.bf16.msra.mxu1 %v610_v17  ;;  %582 = vmatpush3.bf16.msra.mxu0 %v617_v24 }
  0x23   :  { %561 = vmatprep.subr.bf16.mxu1 %v611_v18  ;;  %583 = vmatprep.subr.bf16.mxu0 %v618_v25 }
  0x26   :  { %562 = vmatpush3.bf16.msra.mxu1 %v611_v18  ;;  %584 = vmatpush3.bf16.msra.mxu0 %v618_v25 }
  0x27   :  { %563 = vmatprep.subr.bf16.mxu1 %v612_v19  ;;  %585 = vmatprep.subr.bf16.mxu0 %v619_v63 }
  0x2a   :  { %564 = vmatpush3.bf16.msra.mxu1 %v612_v19  ;;  %586 = vmatpush3.bf16.msra.mxu0 %v619_v63 }
  0x2b   :  { %565 = vmatprep.subr.bf16.mxu1 %v613_v20  ;;  %587 = vmatprep.subr.bf16.mxu0 %v620_v0 }
  0x2e   :  { %566 = vmatpush3.bf16.msra.mxu1 %v613_v20  ;;  %588 = vmatpush3.bf16.msra.mxu0 %v620_v0 }
  0x2f   :  { %589 = vmatprep.subr.bf16.mxu0 %v621_v1 }
  0x32   :  { %590 = vmatpush3.bf16.msra.mxu0 %v621_v1 }
  0xd3   :  { %v545_v26 = vpop.f32.mrf.mxu0 }
  0xd4   :  { %v117_v30 = vadd.f32 %v545_v26, %v488_v27 }
  0xd5   :  { %v108_v28 = vpop.f32.mrf.mxu0 }
  0xd6   :  { %v109_v29 = vadd.f32 %v488_v27, %v108_v28  ;;  %v149_v37 = vmul.f32 0.01, %v117_v30  ;;  %vm141_vm3 = vcmp.ge.f32.partialorder %v117_v30, 0.0 }
  0xd7   :  { %v546_v31 = vpop.f32.mrf.mxu0 }
  0xd8   :  { %v120_v32 = vadd.f32 %v546_v31, %v488_v27  ;;  %v147_v34 = vmul.f32 0.01, %v109_v29  ;;  %vm139_vm2 = vcmp.ge.f32.partialorder %v109_v29, 0.0  ;;  %v157_v48 = vsel %vm141_vm3, %v117_v30, %v149_v37 }
  0xd9   :  { %v111_v33 = vpop.f32.mrf.mxu0 }
  0xda   :  { %vm142_vm1 = vcmp.ge.f32.partialorder %v120_v32, 0.0  ;;  %v150_v35 = vmul.f32 0.01, %v120_v32  ;;  %v112_v36 = vadd.f32 %v488_v27, %v111_v33  ;;  %v155_v43 = vsel %vm139_vm2, %v109_v29, %v147_v34 }
  0xdb   :  { %v549_v38 = vpop.f32.mrf.mxu0 }
  0xdc   :  { %v148_v39 = vmul.f32 0.01, %v112_v36  ;;  %vm140_vm4 = vcmp.ge.f32.partialorder %v112_v36, 0.0  ;;  %v158_v41 = vsel %vm142_vm1, %v120_v32, %v150_v35  ;;  %v133_v45 = vadd.f32 %v549_v38, %v488_v27 }
  0xdd   :  { %v124_v40 = vpop.f32.mrf.mxu0  ;;  %v164_v50 = vpack.c.bf16 %v158_v41, %v157_v48 }
  0xde   :  { %v125_v42 = vadd.f32 %v488_v27, %v124_v40  ;;  %v156_v44 = vsel %vm140_vm4, %v112_v36, %v148_v39  ;;  %v153_v55 = vmul.f32 0.01, %v133_v45  ;;  %vm145_vm7 = vcmp.ge.f32.partialorder %v133_v45, 0.0  ;;  %v503_v39 = vld [vmem:[%s776_s4 + $0x2] ss:$0 sm:$0xff]  ;;  %s642_s4 = scalar_lea.vmem %s477_s10, 1024 }
  0xdf   :  { %v550_v46 = vpop.f32.mrf.mxu0  ;;  %v163_v47 = vpack.c.bf16 %v156_v44, %v155_v43  ;;  %p643_p5 = scmp.ne.s32.totalorder %s477_s10, %s642_s4  ;;  %p648_p7 = scmp.lt.s32.totalorder %s642_s4, %s642_s4 }
  0xe0   :  { %v136_v49 = vadd.f32 %v550_v46, %v488_v27  ;;  %v151_v52 = vmul.f32 0.01, %v125_v42  ;;  %vm143_vm6 = vcmp.ge.f32.partialorder %v125_v42, 0.0  ;;  %v161_v61 = vsel %vm145_vm7, %v133_v45, %v153_v55 }
  0xe1   :  { %v127_v51 = vpop.f32.mrf.mxu0  ;;  %567 = vmatprep.mubr.bf16.mxu1 %v163_v47  ;;  %p649_p8 = por %p648_p7, %p647_p6 }
  0xe2   :  { %vm146_vm5 = vcmp.ge.f32.partialorder %v136_v49, 0.0  ;;  %v154_v53 = vmul.f32 0.01, %v136_v49  ;;  %v128_v54 = vadd.f32 %v488_v27, %v127_v51  ;;  %568 = vmatmul.mubr.bf16.vlgmr.msra.gmra.mxu1 %v164_v50  ;;  %v159_v58 = vsel %vm143_vm6, %v125_v42, %v151_v52 }
  0xe3   :  { %p650_p9 = pnand %p649_p8, %p643_p5 }
  0xe4   :  { %vm144_vm8 = vcmp.ge.f32.partialorder %v128_v54, 0.0  ;;  %v152_v56 = vmul.f32 0.01, %v128_v54  ;;  %v162_v57 = vsel %vm146_vm5, %v136_v49, %v154_v53 }
  0xe5   :  { %v166_v62 = vpack.c.bf16 %v162_v57, %v161_v61 }
  0xe6   :  { %v160_v59 = vsel %vm144_vm8, %v128_v54, %v152_v56 }
  0xe7   :  { %v165_v60 = vpack.c.bf16 %v160_v59, %v159_v58 }
  0xe9   :  { %571 = vmatprep.mubr.bf16.mxu1 %v165_v60 }
  0xea   :  { %572 = vmatmul.mubr.bf16.gmra.mxu1 %v166_v62 }
 0x1a2   :  { %v569_v2 = vpop.f32.mrf.mxu1 }
 0x1a3   :  { %v279_v6 = vadd.f32 %v569_v2, %v494_v3 }
 0x1a4   :  { %v270_v4 = vpop.f32.mrf.mxu1 }
 0x1a5   :  { %v271_v5 = vadd.f32 %v494_v3, %v270_v4  ;;  %v311_v13 = vmul.f32 0.01, %v279_v6  ;;  %vm303_vm11 = vcmp.ge.f32.partialorder %v279_v6, 0.0 }
 0x1a6   :  { %v570_v7 = vpop.f32.mrf.mxu1 }
 0x1a7   :  { %v282_v8 = vadd.f32 %v570_v7, %v494_v3  ;;  %v309_v10 = vmul.f32 0.01, %v271_v5  ;;  %vm301_vm10 = vcmp.ge.f32.partialorder %v271_v5, 0.0  ;;  %v319_v21 = vsel %vm303_vm11, %v279_v6, %v311_v13 }
 0x1a8   :  { %v273_v9 = vpop.f32.mrf.mxu1 }
 0x1a9   :  { %vm304_vm9 = vcmp.ge.f32.partialorder %v282_v8, 0.0  ;;  %v312_v11 = vmul.f32 0.01, %v282_v8  ;;  %v274_v12 = vadd.f32 %v494_v3, %v273_v9  ;;  %v317_v19 = vsel %vm301_vm10, %v271_v5, %v309_v10 }
 0x1aa   :  { %v573_v14 = vpop.f32.mrf.mxu1 }
 0x1ab   :  { %vm302_vm12 = vcmp.ge.f32.partialorder %v274_v12, 0.0  ;;  %v310_v15 = vmul.f32 0.01, %v274_v12  ;;  %v320_v16 = vsel %vm304_vm9, %v282_v8, %v312_v11  ;;  %v295_v22 = vadd.f32 %v573_v14, %v494_v3 }
 0x1ac   :  { %v286_v17 = vpop.f32.mrf.mxu1  ;;  %v326_v25 = vpack.c.bf16 %v320_v16, %v319_v21 }
 0x1ad   :  { %v287_v18 = vadd.f32 %v494_v3, %v286_v17  ;;  %v318_v20 = vsel %vm302_vm12, %v274_v12, %v310_v15  ;;  %v315_v31 = vmul.f32 0.01, %v295_v22  ;;  %vm307_vm15 = vcmp.ge.f32.partialorder %v295_v22, 0.0 }
 0x1ae   :  { %v574_v23 = vpop.f32.mrf.mxu1  ;;  %v325_v24 = vpack.c.bf16 %v318_v20, %v317_v19 }
 0x1af   :  { %v298_v26 = vadd.f32 %v574_v23, %v494_v3  ;;  %v313_v28 = vmul.f32 0.01, %v287_v18  ;;  %vm305_vm14 = vcmp.ge.f32.partialorder %v287_v18, 0.0  ;;  %v323_v37 = vsel %vm307_vm15, %v295_v22, %v315_v31 }
 0x1b0   :  { %v289_v27 = vpop.f32.mrf.mxu1  ;;  %591 = vmatprep.mubr.bf16.mxu0 %v325_v24 }
 0x1b1   :  { %vm308_vm13 = vcmp.ge.f32.partialorder %v298_v26, 0.0  ;;  %v316_v29 = vmul.f32 0.01, %v298_v26  ;;  %v290_v30 = vadd.f32 %v494_v3, %v289_v27  ;;  %592 = vmatmul.mubr.bf16.vlgmr.msra.gmra.mxu0 %v326_v25  ;;  %v321_v34 = vsel %vm305_vm14, %v287_v18, %v313_v28 }
 0x1b3   :  { %vm306_vm0 = vcmp.ge.f32.partialorder %v290_v30, 0.0  ;;  %v314_v32 = vmul.f32 0.01, %v290_v30  ;;  %v324_v33 = vsel %vm308_vm13, %v298_v26, %v316_v29 }
 0x1b4   :  { %v328_v38 = vpack.c.bf16 %v324_v33, %v323_v37 }
 0x1b5   :  { %v322_v35 = vsel %vm306_vm0, %v290_v30, %v314_v32 }
 0x1b6   :  { %v327_v36 = vpack.c.bf16 %v322_v35, %v321_v34 }
 0x1b8   :  { %595 = vmatprep.mubr.bf16.mxu0 %v327_v36 }
 0x1b9   :  { %596 = vmatmul.mubr.bf16.gmra.mxu0 %v328_v38 }
 0x271   :  { %v593_v40 = vpop.f32.mrf.mxu0 }
 0x272   :  { %v441_v41 = vadd.f32 %v593_v40, %v503_v39 }
 0x273   :  { %v432_v42 = vpop.f32.mrf.mxu0 }
 0x274   :  { %465 = vst [vmem:[#allocation5 + $0x10] sm:$0xff] %v441_v41  ;;  %v433_v43 = vadd.f32 %v503_v39, %v432_v42 }
 0x275   :  { %v594_v44 = vpop.f32.mrf.mxu0 }
 0x276   :  { %463 = vst [vmem:[#allocation5] sm:$0xff] %v433_v43  ;;  %v444_v45 = vadd.f32 %v594_v44, %v503_v39 }
 0x277   :  { %v435_v46 = vpop.f32.mrf.mxu0 }
 0x278   :  { %466 = vst [vmem:[#allocation5 + $0x18] sm:$0xff] %v444_v45  ;;  %v436_v47 = vadd.f32 %v503_v39, %v435_v46 }
 0x279   :  { %v597_v48 = vpop.f32.mrf.mxu0 }
 0x27a   :  { %464 = vst [vmem:[#allocation5 + $0x8] sm:$0xff] %v436_v47  ;;  %v457_v49 = vadd.f32 %v597_v48, %v503_v39 }
 0x27b   :  { %v448_v50 = vpop.f32.mrf.mxu0 }
 0x27c   :  { %469 = vst [vmem:[#allocation5 + $0x30] sm:$0xff] %v457_v49  ;;  %v449_v51 = vadd.f32 %v503_v39, %v448_v50 }
 0x27d   :  { %v598_v52 = vpop.f32.mrf.mxu0 }
 0x27e   :  { %467 = vst [vmem:[#allocation5 + $0x20] sm:$0xff] %v449_v51  ;;  %v460_v53 = vadd.f32 %v598_v52, %v503_v39 }
 0x27f   :  { %v451_v54 = vpop.f32.mrf.mxu0 }
 0x280   :  { %470 = vst [vmem:[#allocation5 + $0x38] sm:$0xff] %v460_v53  ;;  %v452_v55 = vadd.f32 %v503_v39, %v451_v54 }
 0x282   :  { %468 = vst [vmem:[#allocation5 + $0x28] sm:$0xff] %v452_v55 }
 0x283   :  { %653 = shalt.err (!%p650_p9)
}
 0x284   :  { %s670_s11 = smov 128   ;;  %s671_s12 = smov 8  }
 0x285   :  { %482 = dma.vmem_to_hbm [thread:$0]  %s477_s10, 1024, %s777_s5, [#allocation4], %s670_s11, %s670_s11, %s671_s12  }
 0x286   :  { %664 = dma.done.wait [#allocation4], 1024  }
 0x287   :  { %665 = vsyncadd [#allocation4], 4294966272 }
 0x288   :  { %486 = vsyncpa [#allocation3], 1 }
 0x289   :  { %487 = vsyncpa [#allocation4], 1 }

</bundles_post_ra>
